<compile_context>
chip_gen: v7x
topology: tpu7x:2x2x1
jax: 0.10.0
libtpu: 0.0.40
codegen_flags: <defaults>
</compile_context>

<pallas_src>
import jax
import jax.numpy as jnp
from jax.experimental import pallas as pl
from jax.experimental.pallas import tpu as pltpu


def feature_embedding_kernel(
    node_ref,     # (Bt, N, F_in)   full node features
    adjf_ref,     # (Bt, N, N)      forward adjacency
    adjb_ref,     # (Bt, N, N)      backward adjacency
    w_ref,        # (F_in - D, 4D)  fused block-diagonal weight
    b_ref,        # (1, 4D)         fused bias
    out_ref,      # (Bt, N, 2D)     output embedding
):
    Bt, N, F_in = node_ref.shape
    two_d = out_ref.shape[-1]
    D = two_d // 2
    rest_size = F_in - D

    x = node_ref[...]                              # (Bt, N, F_in)
    dyn = x[:, :, :D]                              # (Bt, N, D)
    rest = x[:, :, D:]                             # (Bt, N, S + F_stat) = [struct | stat]

    # One fused projection on a tall (Bt*N, rest) matrix:
    #   cols [0:D)     = struct @ Wf + bf
    #   cols [D:2D)    = struct @ Wb + bb
    #   cols [2D:4D)   = stat   @ Wl + bl
    rest2d = rest.reshape(Bt * N, rest_size)
    proj = jnp.dot(rest2d, w_ref[...],
                   preferred_element_type=jnp.float32) + b_ref[...]
    proj = proj.reshape(Bt, N, 4 * D)

    h_f = proj[:, :, :D]                           # (Bt, N, D)
    h_b = proj[:, :, D:2 * D]                      # (Bt, N, D)
    stat_code = jax.nn.sigmoid(proj[:, :, 2 * D:])  # (Bt, N, 2D)

    # Batched adjacency propagation (GCN): adj @ (xW + b)
    dist_f = jnp.einsum("bnm,bmd->bnd", adjf_ref[...], h_f,
                        preferred_element_type=jnp.float32)
    dist_b = jnp.einsum("bnm,bmd->bnd", adjb_ref[...], h_b,
                        preferred_element_type=jnp.float32)

    # Gate by dynamic features, concat, gate by sigmoid(static embedding),
    # then write the full lane-dense block in one unmasked store.
    emb = jnp.concatenate([dyn * dist_f, dyn * dist_b], axis=-1)  # (Bt, N, 2D)
    out_ref[...] = (emb * stat_code).astype(out_ref.dtype)


def _choose_block_batch(B, N, F_in, D, vmem_budget_bytes=48 * 1024 * 1024):
    """Pick Bt: amortize step overhead / fill MXU M-dim, keep >=2 grid steps,
    and stay inside a conservative (double-buffered) VMEM budget."""
    best = 1
    for bt in range(1, B + 1):
        if B % bt:
            continue
        # f32, double-buffered: node + 2*adj inputs + output block
        step_bytes = 4 * bt * N * (F_in + 2 * N + 2 * D) * 2
        if step_bytes > vmem_budget_bytes:
            continue
        if B >= 2 and B // bt < 2:
            continue  # keep >=2 grid steps so both v7x TensorCores get work
        best = bt
        if bt * N >= 512:  # enough M-rows; no need to grow further
            break
    return best


def feature_embedding_forward(node_feature, adj_forward, adj_backward, params,
                              dest_size, struct_size):
    """node_feature: (B, N, input_size); adj_*: (B, N, N)."""
    B, N, F_in = node_feature.shape
    D = dest_size
    S = struct_size - dest_size
    F_stat = F_in - struct_size
    rest_size = S + F_stat

    wf, bf, wb, bb, wl, bl = (
        params["w_gcn_f"], params["b_gcn_f"],
        params["w_gcn_b"], params["b_gcn_b"],
        params["w_lin"], params["b_lin"],
    )

    # Fuse the three projections into one block-diagonal weight + one bias.
    w_big = jnp.zeros((rest_size, 4 * D), dtype=jnp.float32)
    w_big = w_big.at[:S, :D].set(wf)
    w_big = w_big.at[:S, D:2 * D].set(wb)
    w_big = w_big.at[S:, 2 * D:].set(wl)
    b_big = jnp.concatenate([bf, bb, bl], axis=-1)  # (1, 4D)

    Bt = _choose_block_batch(B, N, F_in, D)
    grid = (B // Bt,)

    out_shape = jax.ShapeDtypeStruct((B, N, 2 * D), jnp.float32)

    batched = lambda feat: pl.BlockSpec((Bt, N, feat), lambda b: (b, 0, 0))
    whole2d = lambda r, c: pl.BlockSpec((r, c), lambda b: (0, 0))

    return pl.pallas_call(
        feature_embedding_kernel,
        out_shape=out_shape,
        grid_spec=pltpu.PrefetchScalarGridSpec(
            num_scalar_prefetch=0,
            grid=grid,
            in_specs=[
                batched(F_in),              # node_feature (unsplit)
                batched(N),                 # adj_forward
                batched(N),                 # adj_backward
                whole2d(rest_size, 4 * D),  # fused weight
                whole2d(1, 4 * D),          # fused bias
            ],
            out_specs=pl.BlockSpec((Bt, N, 2 * D), lambda b: (b, 0, 0)),
        ),
        compiler_params=pltpu.CompilerParams(
            dimension_semantics=("parallel",),
            vmem_limit_bytes=64 * 1024 * 1024,
        ),
    )(node_feature, adj_forward, adj_backward, w_big, b_big)


def reference_forward(node_feature, adj_forward, adj_backward, params,
                      dest_size, struct_size):
    dyn = node_feature[:, :, :dest_size]
    struct = node_feature[:, :, dest_size:struct_size]
    stat = node_feature[:, :, struct_size:]
    h_f = jnp.einsum("bns,sd->bnd", struct, params["w_gcn_f"]) + params["b_gcn_f"]
    dist_f = jnp.einsum("bnm,bmd->bnd", adj_forward, h_f)
    h_b = jnp.einsum("bns,sd->bnd", struct, params["w_gcn_b"]) + params["b_gcn_b"]
    dist_b = jnp.einsum("bnm,bmd->bnd", adj_backward, h_b)
    emb = jnp.concatenate([dyn * dist_f, dyn * dist_b], axis=2)
    stat_code = jax.nn.sigmoid(
        jnp.einsum("bnf,fe->bne", stat, params["w_lin"]) + params["b_lin"])
    return emb * stat_code


if __name__ == "__main__":
    # Small shapes consistent with the module:
    #   input_size = 32, struct_size = 16, output_size (dest_size) = 8
    B, N = 2, 16
    input_size, struct_size, dest_size = 32, 16, 8
    D = dest_size
    S = struct_size - dest_size        # gcn input dim = 8
    F_stat = input_size - struct_size  # linear input dim = 16

    key = jax.random.PRNGKey(0)
    ks = jax.random.split(key, 10)

    node_feature = jax.random.normal(ks[0], (B, N, input_size), dtype=jnp.float32)
    adj_forward = jax.random.uniform(ks[1], (B, N, N), dtype=jnp.float32)
    adj_backward = jax.random.uniform(ks[2], (B, N, N), dtype=jnp.float32)

    params = {
        "w_gcn_f": 0.1 * jax.random.normal(ks[3], (S, D), dtype=jnp.float32),
        "b_gcn_f": 0.1 * jax.random.normal(ks[4], (1, D), dtype=jnp.float32),
        "w_gcn_b": 0.1 * jax.random.normal(ks[5], (S, D), dtype=jnp.float32),
        "b_gcn_b": 0.1 * jax.random.normal(ks[6], (1, D), dtype=jnp.float32),
        "w_lin":   0.1 * jax.random.normal(ks[7], (F_stat, 2 * D), dtype=jnp.float32),
        "b_lin":   0.1 * jax.random.normal(ks[8], (1, 2 * D), dtype=jnp.float32),
    }

    out = feature_embedding_forward(node_feature, adj_forward, adj_backward,
                                    params, dest_size, struct_size)
    out = jax.block_until_ready(out)

    ref = reference_forward(node_feature, adj_forward, adj_backward,
                            params, dest_size, struct_size)
    assert out.shape == (B, N, 2 * D)
    assert jnp.allclose(out, ref, atol=1e-5, rtol=1e-5), "mismatch vs reference"
    print("KERNEL_OK")
</pallas_src>

<mosaic_0001>
module attributes {stable_mosaic.version = 11 : i64} {
  func.func @feature_embedding_kernel(%arg0: i32, %arg1: memref<1x16x32xf32, #tpu.memory_space<vmem>>, %arg2: memref<1x16x16xf32, #tpu.memory_space<vmem>>, %arg3: memref<1x16x16xf32, #tpu.memory_space<vmem>>, %arg4: memref<24x32xf32, #tpu.memory_space<vmem>>, %arg5: memref<1x32xf32, #tpu.memory_space<vmem>>, %arg6: memref<1x16x16xf32, #tpu.memory_space<vmem>>) attributes {dimension_semantics = [#tpu.dimension_semantics<parallel>], iteration_bounds = array<i64: 2>, scalar_prefetch = 0 : i64, scratch_operands = 0 : i64, tpu.core_type = #tpu.core_type<tc>, window_params = [{transform_indices = @transform_0, window_bounds = array<i64: 1, 16, 32>}, {transform_indices = @transform_1, window_bounds = array<i64: 1, 16, 16>}, {transform_indices = @transform_2, window_bounds = array<i64: 1, 16, 16>}, {pipeline_mode = #tpu.pipeline_mode<synchronous>, transform_indices = @transform_3, window_bounds = array<i64: 24, 32>}, {pipeline_mode = #tpu.pipeline_mode<synchronous>, transform_indices = @transform_4, window_bounds = array<i64: 1, 32>}, {transform_indices = @transform_5, window_bounds = array<i64: 1, 16, 16>}]} {
    %c0 = arith.constant 0 : index
    %c0_0 = arith.constant 0 : index
    %c0_1 = arith.constant 0 : index
    %0 = vector.load %arg1[%c0, %c0_0, %c0_1] : memref<1x16x32xf32, #tpu.memory_space<vmem>>, vector<1x16x32xf32>
    %1 = vector.extract_strided_slice %0 {offsets = [0, 0, 0], sizes = [1, 16, 8], strides = [1, 1, 1]} : vector<1x16x32xf32> to vector<1x16x8xf32>
    %2 = vector.extract_strided_slice %0 {offsets = [0, 0, 8], sizes = [1, 16, 24], strides = [1, 1, 1]} : vector<1x16x32xf32> to vector<1x16x24xf32>
    %3 = vector.shape_cast %2 : vector<1x16x24xf32> to vector<16x24xf32>
    %c0_2 = arith.constant 0 : index
    %c0_3 = arith.constant 0 : index
    %4 = vector.load %arg4[%c0_2, %c0_3] : memref<24x32xf32, #tpu.memory_space<vmem>>, vector<24x32xf32>
    %cst = arith.constant dense<0.000000e+00> : vector<16x32xf32>
    %5 = tpu.matmul %3, %4, %cst {dimension_numbers = #tpu.dot_dimension_numbers<[1], [0], [0], [1], [0, 0, 1, 1], [], []>} : vector<16x24xf32>, vector<24x32xf32>, vector<16x32xf32> -> vector<16x32xf32>
    %c0_4 = arith.constant 0 : index
    %c0_5 = arith.constant 0 : index
    %6 = vector.load %arg5[%c0_4, %c0_5] : memref<1x32xf32, #tpu.memory_space<vmem>>, vector<1x32xf32>
    %7 = vector.broadcast %6 : vector<1x32xf32> to vector<16x32xf32>
    %8 = arith.addf %5, %7 : vector<16x32xf32>
    %9 = vector.shape_cast %8 : vector<16x32xf32> to vector<1x16x32xf32>
    %10 = vector.extract_strided_slice %9 {offsets = [0, 0, 0], sizes = [1, 16, 8], strides = [1, 1, 1]} : vector<1x16x32xf32> to vector<1x16x8xf32>
    %11 = vector.extract_strided_slice %9 {offsets = [0, 0, 8], sizes = [1, 16, 8], strides = [1, 1, 1]} : vector<1x16x32xf32> to vector<1x16x8xf32>
    %12 = vector.extract_strided_slice %9 {offsets = [0, 0, 16], sizes = [1, 16, 16], strides = [1, 1, 1]} : vector<1x16x32xf32> to vector<1x16x16xf32>
    %13 = arith.negf %12 : vector<1x16x16xf32>
    %14 = math.exp %13 : vector<1x16x16xf32>
    %cst_6 = arith.constant 1.000000e+00 : f32
    %15 = vector.broadcast %cst_6 : f32 to vector<1x16x16xf32>
    %16 = arith.addf %15, %14 : vector<1x16x16xf32>
    %17 = arith.divf %15, %16 : vector<1x16x16xf32>
    %c0_7 = arith.constant 0 : index
    %c0_8 = arith.constant 0 : index
    %c0_9 = arith.constant 0 : index
    %18 = vector.load %arg2[%c0_7, %c0_8, %c0_9] : memref<1x16x16xf32, #tpu.memory_space<vmem>>, vector<1x16x16xf32>
    "tpu.trace_start"() <{level = 10 : i32, message = "bnm,bmd->bnd"}> : () -> ()
    %cst_10 = arith.constant dense<0.000000e+00> : vector<1x16x8xf32>
    %19 = tpu.matmul %18, %10, %cst_10 {dimension_numbers = #tpu.dot_dimension_numbers<[2], [1], [1], [2], [0, 0, 0, 1, 1, 2], [0], [0]>} : vector<1x16x16xf32>, vector<1x16x8xf32>, vector<1x16x8xf32> -> vector<1x16x8xf32>
    "tpu.trace_stop"() : () -> ()
    %c0_11 = arith.constant 0 : index
    %c0_12 = arith.constant 0 : index
    %c0_13 = arith.constant 0 : index
    %20 = vector.load %arg3[%c0_11, %c0_12, %c0_13] : memref<1x16x16xf32, #tpu.memory_space<vmem>>, vector<1x16x16xf32>
    "tpu.trace_start"() <{level = 10 : i32, message = "bnm,bmd->bnd"}> : () -> ()
    %cst_14 = arith.constant dense<0.000000e+00> : vector<1x16x8xf32>
    %21 = tpu.matmul %20, %11, %cst_14 {dimension_numbers = #tpu.dot_dimension_numbers<[2], [1], [1], [2], [0, 0, 0, 1, 1, 2], [0], [0]>} : vector<1x16x16xf32>, vector<1x16x8xf32>, vector<1x16x8xf32> -> vector<1x16x8xf32>
    "tpu.trace_stop"() : () -> ()
    %22 = arith.mulf %1, %19 : vector<1x16x8xf32>
    %23 = arith.mulf %1, %21 : vector<1x16x8xf32>
    %24 = tpu.concatenate %22, %23 in 2 : vector<1x16x8xf32>, vector<1x16x8xf32> -> vector<1x16x16xf32>
    %25 = arith.mulf %24, %17 : vector<1x16x16xf32>
    %c0_15 = arith.constant 0 : index
    %c0_16 = arith.constant 0 : index
    %c0_17 = arith.constant 0 : index
    %26 = vector.load %arg6[%c0_15, %c0_16, %c0_17] : memref<1x16x16xf32, #tpu.memory_space<vmem>>, vector<1x16x16xf32>
    tpu.vector_store %arg6[%c0_15, %c0_16, %c0_17], %25 {strides = array<i32>} : memref<1x16x16xf32, #tpu.memory_space<vmem>>, vector<1x16x16xf32>,
    return
  }
  func.func @transform_0(%arg0: i32) -> (i32, i32, i32) {
    %c0_i32 = arith.constant 0 : i32
    %c0_i32_0 = arith.constant 0 : i32
    %c0_i32_1 = arith.constant 0 : i32
    return %arg0, %c0_i32, %c0_i32_0 : i32, i32, i32
  }
  func.func @transform_1(%arg0: i32) -> (i32, i32, i32) {
    %c0_i32 = arith.constant 0 : i32
    %c0_i32_0 = arith.constant 0 : i32
    %c0_i32_1 = arith.constant 0 : i32
    return %arg0, %c0_i32, %c0_i32_0 : i32, i32, i32
  }
  func.func @transform_2(%arg0: i32) -> (i32, i32, i32) {
    %c0_i32 = arith.constant 0 : i32
    %c0_i32_0 = arith.constant 0 : i32
    %c0_i32_1 = arith.constant 0 : i32
    return %arg0, %c0_i32, %c0_i32_0 : i32, i32, i32
  }
  func.func @transform_3(%arg0: i32) -> (i32, i32) {
    %c0_i32 = arith.constant 0 : i32
    %c0_i32_0 = arith.constant 0 : i32
    %c0_i32_1 = arith.constant 0 : i32
    return %c0_i32, %c0_i32_0 : i32, i32
  }
  func.func @transform_4(%arg0: i32) -> (i32, i32) {
    %c0_i32 = arith.constant 0 : i32
    %c0_i32_0 = arith.constant 0 : i32
    %c0_i32_1 = arith.constant 0 : i32
    return %c0_i32, %c0_i32_0 : i32, i32
  }
  func.func @transform_5(%arg0: i32) -> (i32, i32, i32) {
    %c0_i32 = arith.constant 0 : i32
    %c0_i32_0 = arith.constant 0 : i32
    %c0_i32_1 = arith.constant 0 : i32
    return %arg0, %c0_i32, %c0_i32_0 : i32, i32, i32
  }
}

</mosaic_0001>

<bundles_post_ra>
// kernel: tpu_custom_call.1
= control target key start
LH: loop header
LB: loop body
LE: loop exit
PB: predicated region body
PF: predicated region fallthrough
CT: control target
= control target key end

     0   :  { %s1608_s0 = inlined_call_operand.hbm [shape: f32[2,16,32], index: 0, kind: input, shape index: {}]   ;;  %s1609_s1 = inlined_call_operand.hbm [shape: f32[2,16,16], index: 1, kind: input, shape index: {}]   ;;  %s1610_s2 = inlined_call_operand.hbm [shape: f32[2,16,16], index: 2, kind: input, shape index: {}]   ;;  %s1611_s3 = inlined_call_operand.hbm [shape: f32[24,32], index: 3, kind: input, shape index: {}]   ;;  %s1612_s4 = inlined_call_operand.hbm [shape: f32[1,32], index: 4, kind: input, shape index: {}]   ;;  %s1613_s5 = inlined_call_operand.hbm [shape: f32[2,16,16], index: 5, kind: output, shape index: {}]  }
   0x1   :  { %1633 = sst [smem:[#allocation19_spill]] %s1609_s1 }
   0x2   :  { %1634 = sst [smem:[#allocation20_spill]] %s1611_s3 }
   0x3   :  { %10 = vsyncpa [#allocation3], 0 }
   0x4   :  { %12 = vsyncpa [#allocation3 + $0x1], 0 }
   0x5   :  { %13 = vsyncpa [#allocation6], 0 }
   0x6   :  { %15 = vsyncpa [#allocation6 + $0x1], 0 }
   0x7   :  { %16 = vsyncpa [#allocation9], 0 }
   0x8   :  { %17 = vsyncpa [#allocation4], 0 }
   0x9   :  { %19 = vsyncpa [#allocation4 + $0x1], 0  ;;  %s1255_s18 = smov 0   ;;  %s1257_s19 = smov 0  }
   0xa   :  { %s1259_s20 = smov 0   ;;  %s1261_s21 = smov 0  }
   0xb LB: > { %1635 = sst [smem:[#allocation16_spill]] %s1211_s21  ;;  %s1276_s22 = sadd.s32 4294967295, %s1211_s21   ;;  %s1211_s21 = sphi %s1261_s21, %s1666_s21   ;;  %s1207_s20 = sphi %s1259_s20, %s1670_s20   ;;  %s1203_s19 = sphi %s1257_s19, %s1669_s19   ;;  %s1199_s18 = sphi %s1255_s18, %s1668_s18  }
   0xc   : > { %s808_s23 = sadd.s32 4294967294, %s1211_s21   ;;  %s1280_s24 = sadd.s32 1, %s1211_s21  }
   0xd   : > { %1636 = sst [smem:[#allocation17_spill]] %s1280_s24  ;;  %s32_s25 = sadd.s32 1, %s1207_s20 }
   0xe   : > { %s29_s26 = ssub.s32 %s1211_s21, %s1280_s24  ;;  %p39_p0 = scmp.ne.s32.totalorder %s1207_s20, %s1203_s19 }
   0xf   : > { %p30_p1 = scmp.eq.s32.totalorder %s29_s26, 0  ;;  %p40_p2 = scmp.eq.s32.totalorder %s1211_s21, 0 }
  0x10   : > { %p45_p3 = scmp.ne.s32.totalorder %s1203_s19, %s1199_s18  ;;  %p1614_p4 = scmp.eq.s32.totalorder %s1276_s22, 0 }
  0x11   : > { %s1292_s27 = scalar_select %p30_p1, %s1207_s20, %s32_s25  }
  0x12   : > { %p1294_p5 = por %p40_p2, %p39_p0  ;;  %p1300_p6 = por %p1614_p4, %p45_p3 }
  0x13   : > { %1637 = sst [smem:[#allocation18_spill]] %s1292_s27  ;;  %p163_p7 = scmp.eq.s32.totalorder %s1276_s22, 1 }
  0x14   : > { %s1638_s28 = scalar_select %p1294_p5, 1, 0 }
  0x15   : > { %s1639_s29 = scalar_select %p1300_p6, 1, 0 }
  0x16   : > { %p169_p8 = scmp.eq.s32.totalorder %s808_s23, 1  ;;  %p809_p9 = scmp.ge.s32.totalorder %s1211_s21, 1 }
  0x17   : > { %p176_p10 = scmp.lt.s32.totalorder %s1211_s21, 3  ;;  %p1307_p11 = por %p163_p7, %p39_p0 }
  0x18   : > { %p1311_p12 = por %p169_p8, %p45_p3  ;;  %s1213_s8 = smov [#allocation8]  }
  0x19   : > { %s1640_s30 = scalar_select %p1307_p11, 1, 0 }
  0x1a   : > { %s1641_s6 = scalar_select %p1311_p12, 1, 0 }
  0x1b   : > { %p1315_p13 = pnand %p809_p9, %p176_p10  ;;  %s188_s9 = sshll.u32 %s1213_s8, 4  ;;  %s189_s9 = int_to_ptr.vmem [resolvable:$true] %s188_s9 }
  0x1c   : > { %s1618_s11 = sand.u32 1, %s1207_s20   ;;  %s1644_s3 = sld [smem:[#allocation20_spill]] }
  0x1d   : > { %s1642_s7 = scalar_select %p1315_p13, 1, 0 }
  0x1e   : > { %p911_p1 = pneg %p1315_p13  ;;  %s1332_s12 = sshll.u32 %s1618_s11, 4 }
  0x20   : > { %p1323_p2 = pnand %p911_p1, %p1614_p4 }
  0x22   : > { %s1643_s10 = scalar_select %p1323_p2, 1, 0 }
  0x23   : > { %s991_s15 = scalar_lea.hbm %s1644_s3, 384  ;;  %p1623_p8 = pneg %p1323_p2 }
  0x24   : > { %p992_p7 = scmp.ne.s32.totalorder %s1644_s3, %s991_s15  ;;  %p998_p1 = scmp.lt.u32.totalorder %s991_s15, %s1644_s3 }
  0x26   : > { %p994_p9 = pnand %p1623_p8, %p992_p7 }
  0x28   : > { %p995_p10 = pneg %p994_p9 }
  0x2a   : > { %p1000_p0 = pnand %p998_p1, %p995_p10 }
  0x2c   : > { %1003 = shalt.err (!%p1000_p0)
}
  0x2d   : > { %s1004_s26 = scalar_lea.vmem %s189_s9, 384  ;;  %p1012_p11 = scmp.lt.s32.totalorder %s189_s9, %s189_s9 }
  0x2e   : > { %p1005_p4 = scmp.ne.s32.totalorder %s189_s9, %s1004_s26  ;;  %p1013_p6 = scmp.lt.s32.totalorder %s1004_s26, %s1004_s26 }
  0x30   : > { %p1007_p3 = pnand %p1005_p4, %p1623_p8  ;;  %p1014_p13 = por %p1013_p6, %p1012_p11 }
  0x32   : > { %p1008_p12 = pneg %p1007_p3 }
  0x34   : > { %p1015_p5 = pnand %p1014_p13, %p1008_p12 }
  0x36   : > { %1018 = shalt.err (!%p1015_p5)
}
  0x37   : > { %s1619_s8 = smov 128   ;;  %s1621_s13 = smov 8  }
  0x38   : > { %914 = dma.hbm_to_vmem [thread:$0]  (!%p1323_p2), %s1644_s3, 384, %s189_s9, [#allocation9], %s1619_s8, %s1619_s8, %s1621_s13  }
  0x39   : > { %s1360_s16 = sshll.u32 %s1211_s21, 8  ;;  %p1645_p4 = scmp.ne.s32.totalorder %s1638_s28, 0 }
  0x3a   : > { %p1646_p5 = scmp.lt.s32.totalorder %s1211_s21, 2  ;;  %s234_s23 = sand.u32 1, %s1211_s21  }
  0x3b   : > { %s1648_s1 = sld [smem:[#allocation19_spill]]  ;;  %s238_s9 = scalar_lea.vmem [#allocation5], %s1332_s12 }
  0x3c   : > { %p1366_p6 = pnand %p1646_p5, %p1645_p4  ;;  %s245_s14 = sshll.u32 %s238_s9, 4  ;;  %s1378_s14 = int_to_ptr.vmem [resolvable:$true] %s245_s14 }
  0x3d   : > { %s1380_s28 = scalar_lea.sflag [#allocation6], %s234_s23 }
  0x3e   : > { %s1647_s17 = scalar_select %p1366_p6, 1, 0 }
  0x3f   : > { %p1386_p12 = pneg %p1366_p6 }
  0x41   : > { %s1375_s11 = scalar_lea.hbm %s1648_s1, %s1360_s16  ;;  %s1024_s13 = scalar_lea.hbm %s1648_s1, 512 }
  0x42   : > { %s1019_s15 = scalar_lea.hbm %s1375_s11, 256  ;;  %p1025_p3 = scmp.lt.u32.totalorder %s1375_s11, %s1648_s1 }
  0x43   : > { %p1020_p11 = scmp.ne.s32.totalorder %s1375_s11, %s1019_s15  ;;  %p1026_p7 = scmp.lt.u32.totalorder %s1024_s13, %s1019_s15 }
  0x44   : > { %s1649_s8 = scalar_select %p1386_p12, 1, 0 }
  0x45   : > { %p1022_p13 = pnand %p1386_p12, %p1020_p11  ;;  %p1027_p9 = por %p1026_p7, %p1025_p3 }
  0x46   : > { %p1028_p10 = scmp.lt.u32.totalorder %s1019_s15, %s1375_s11 }
  0x47   : > { %p1023_p0 = pneg %p1022_p13 }
  0x48   : > { %p1029_p1 = por %p1028_p10, %p1027_p9 }
  0x4a   : > { %p1030_p4 = pnand %p1029_p1, %p1023_p0 }
  0x4c   : > { %1033 = shalt.err (!%p1030_p4)
}
  0x4d   : > { %s1034_s23 = scalar_lea.vmem %s1378_s14, 256  ;;  %s1216_s25 = smov [#allocation5]  }
  0x4e   : > { %p1035_p5 = scmp.ne.s32.totalorder %s1378_s14, %s1034_s23  ;;  %s1039_s26 = sshll.u32 %s1216_s25, 4  ;;  %s1040_s26 = int_to_ptr.vmem [resolvable:$false] %s1039_s26 }
  0x4f   : > { %s1041_s3 = scalar_lea.vmem %s1040_s26, 512  ;;  %p1042_p8 = scmp.lt.s32.totalorder %s1378_s14, %s1040_s26 }
  0x50   : > { %p1037_p11 = pnand %p1035_p5, %p1386_p12  ;;  %p1043_p2 = scmp.lt.s32.totalorder %s1041_s3, %s1034_s23 }
  0x52   : > { %p1038_p13 = pneg %p1037_p11  ;;  %p1044_p3 = por %p1043_p2, %p1042_p8 }
  0x54   : > { %p1045_p7 = pnand %p1044_p3, %p1038_p13 }
  0x56   : > { %1048 = shalt.err (!%p1045_p7)
}
  0x57   : > { %s1650_s13 = smov 8   ;;  %s1651_s15 = smov 128  }
  0x58   : > { %924 = dma.hbm_to_vmem [thread:$0]  (!%p1366_p6), %s1375_s11, 256, %s1378_s14, %s1380_s28, %s1651_s15, %s1651_s15, %s1650_s13  }
  0x59   : > { %s1217_s9 = smov [#allocation10]   ;;  %s1049_s23 = scalar_lea.hbm %s1612_s4, 16 }
  0x5a   : > { %s202_s1 = sshll.u32 %s1217_s9, 4  ;;  %p1050_p2 = scmp.ne.s32.totalorder %s1612_s4, %s1049_s23  ;;  %s203_s1 = int_to_ptr.vmem [resolvable:$true] %s202_s1 }
  0x5b   : > { %p1652_p8 = scmp.ne.s32.totalorder %s1643_s10, 0  ;;  %p1056_p1 = scmp.lt.u32.totalorder %s1049_s23, %s1612_s4 }
  0x5d   : > { %p1653_p0 = pneg %p1652_p8 }
  0x5f   : > { %p1052_p9 = pnand %p1050_p2, %p1653_p0 }
  0x61   : > { %p1053_p10 = pneg %p1052_p9 }
  0x63   : > { %p1058_p4 = pnand %p1056_p1, %p1053_p10 }
  0x65   : > { %1061 = shalt.err (!%p1058_p4)
}
  0x66   : > { %s1062_s11 = scalar_lea.vmem %s203_s1, 16  ;;  %p1654_p11 = pmov %p1653_p0 }
  0x67   : > { %p1063_p5 = scmp.ne.s32.totalorder %s203_s1, %s1062_s11  ;;  %s1069_s27 = scalar_lea.vmem %s203_s1, 32 }
  0x68   : > { %p1070_p7 = scmp.lt.s32.totalorder %s203_s1, %s203_s1  ;;  %p1071_p6 = scmp.lt.s32.totalorder %s1069_s27, %s1062_s11 }
  0x69   : > { %p1065_p13 = pnand %p1063_p5, %p1654_p11 }
  0x6a   : > { %p1072_p12 = por %p1071_p6, %p1070_p7 }
  0x6b   : > { %p1066_p3 = pneg %p1065_p13 }
  0x6d   : > { %p1073_p0 = pnand %p1072_p12, %p1066_p3 }
  0x6f   : > { %1076 = shalt.err (!%p1073_p0)
}
  0x70   : > { %917 = dma.hbm_to_vmem [thread:$0]  (!%p1652_p8), %s1612_s4, 16, %s203_s1, [#allocation9]  }
  0x71   : > { %s1437_s25 = scalar_lea.hbm %s1608_s0, %s1360_s16  ;;  %s217_s23 = scalar_lea.vmem [#allocation2], %s1332_s12 }
  0x72   : > { %s224_s26 = sshll.u32 %s217_s23, 4  ;;  %s1655_s10 = sand.u32 1, %s1207_s20   ;;  %s1440_s26 = int_to_ptr.vmem [resolvable:$true] %s224_s26 }
  0x73   : > { %s1444_s3 = scalar_lea.sflag [#allocation3], %s1655_s10  ;;  %s1077_s11 = scalar_lea.hbm %s1437_s25, 256 }
  0x74   : > { %p1078_p6 = scmp.ne.s32.totalorder %s1437_s25, %s1077_s11  ;;  %p1656_p12 = scmp.ne.s32.totalorder %s1649_s8, 0 }
  0x75   : > { %s1082_s14 = scalar_lea.hbm %s1608_s0, 512  ;;  %p1083_p9 = scmp.lt.u32.totalorder %s1437_s25, %s1608_s0 }
  0x76   : > { %p1080_p2 = pnand %p1078_p6, %p1656_p12  ;;  %p1084_p10 = scmp.lt.u32.totalorder %s1082_s14, %s1077_s11 }
  0x77   : > { %p1086_p4 = scmp.lt.u32.totalorder %s1077_s11, %s1437_s25 }
  0x78   : > { %p1081_p8 = pneg %p1080_p2  ;;  %p1085_p1 = por %p1084_p10, %p1083_p9 }
  0x7a   : > { %p1087_p5 = por %p1086_p4, %p1085_p1 }
  0x7c   : > { %p1088_p11 = pnand %p1087_p5, %p1081_p8 }
  0x7e   : > { %1091 = shalt.err (!%p1088_p11)
}
  0x7f   : > { %s1092_s9 = scalar_lea.vmem %s1440_s26, 256  ;;  %s1218_s23 = smov [#allocation2]  }
  0x80   : > { %p1093_p13 = scmp.ne.s32.totalorder %s1440_s26, %s1092_s9  ;;  %s1097_s10 = sshll.u32 %s1218_s23, 4  ;;  %s1098_s10 = int_to_ptr.vmem [resolvable:$false] %s1097_s10 }
  0x81   : > { %s1099_s1 = scalar_lea.vmem %s1098_s10, 512  ;;  %p1100_p0 = scmp.lt.s32.totalorder %s1440_s26, %s1098_s10 }
  0x82   : > { %p1095_p3 = pnand %p1093_p13, %p1656_p12  ;;  %p1101_p6 = scmp.lt.s32.totalorder %s1099_s1, %s1092_s9 }
  0x84   : > { %p1096_p7 = pneg %p1095_p3  ;;  %p1102_p2 = por %p1101_p6, %p1100_p0 }
  0x86   : > { %p1103_p9 = pnand %p1102_p2, %p1096_p7 }
  0x88   : > { %1106 = shalt.err (!%p1103_p9)
}
  0x89   : > { %p1657_p8 = scmp.ne.s32.totalorder %s1647_s17, 0  ;;  %s1475_s14 = scalar_lea.hbm %s1610_s2, %s1360_s16 }
  0x8a   : > { %s259_s21 = scalar_lea.vmem [#allocation7], %s1332_s12  ;;  %s1107_s9 = scalar_lea.hbm %s1475_s14, 256 }
  0x8b   : > { %921 = dma.hbm_to_vmem [thread:$0]  (!%p1657_p8), %s1437_s25, 256, %s1440_s26, %s1444_s3, %s1651_s15, %s1651_s15, %s1650_s13  }
  0x8c   : > { %s266_s24 = sshll.u32 %s259_s21, 4  ;;  %p1108_p10 = scmp.ne.s32.totalorder %s1475_s14, %s1107_s9  ;;  %s1478_s24 = int_to_ptr.vmem [resolvable:$true] %s266_s24 }
  0x8d   : > { %s1112_s26 = scalar_lea.hbm %s1610_s2, 512  ;;  %p1113_p5 = scmp.lt.u32.totalorder %s1475_s14, %s1610_s2 }
  0x8e   : > { %p1110_p1 = pnand %p1108_p10, %p1656_p12  ;;  %p1114_p11 = scmp.lt.u32.totalorder %s1112_s26, %s1107_s9 }
  0x8f   : > { %p1116_p3 = scmp.lt.u32.totalorder %s1107_s9, %s1475_s14 }
  0x90   : > { %p1111_p4 = pneg %p1110_p1  ;;  %p1115_p13 = por %p1114_p11, %p1113_p5 }
  0x92   : > { %p1117_p7 = por %p1116_p3, %p1115_p13 }
  0x94   : > { %p1118_p0 = pnand %p1117_p7, %p1111_p4 }
  0x96   : > { %1121 = shalt.err (!%p1118_p0)
}
  0x97   : > { %s1122_s12 = scalar_lea.vmem %s1478_s24, 256  ;;  %s1219_s10 = smov [#allocation7]  }
  0x98   : > { %p1123_p6 = scmp.ne.s32.totalorder %s1478_s24, %s1122_s12  ;;  %s1127_s1 = sshll.u32 %s1219_s10, 4  ;;  %s1128_s1 = int_to_ptr.vmem [resolvable:$false] %s1127_s1 }
  0x99   : > { %s1129_s11 = scalar_lea.vmem %s1128_s1, 512  ;;  %p1130_p10 = scmp.lt.s32.totalorder %s1478_s24, %s1128_s1 }
  0x9a   : > { %p1125_p2 = pnand %p1123_p6, %p1656_p12  ;;  %p1131_p1 = scmp.lt.s32.totalorder %s1129_s11, %s1122_s12 }
  0x9c   : > { %p1126_p9 = pneg %p1125_p2  ;;  %p1132_p5 = por %p1131_p1, %p1130_p10 }
  0x9e   : > { %p1133_p11 = pnand %p1132_p5, %p1126_p9 }
  0xa0   : > { %1136 = shalt.err (!%p1133_p11)
}
  0xa1   : > { %927 = dma.hbm_to_vmem [thread:$0]  (!%p1657_p8), %s1475_s14, 256, %s1478_s24, %s1380_s28, %s1651_s15, %s1651_s15, %s1650_s13  }
  0xa2   : > { %p1658_p12 = scmp.ne.s32.totalorder %s1642_s7, 0 }
  0xa3   : > { %s1508_s8 = sand.u32 (!%p1658_p12), 1, %s1203_s19   ;;  %p1659_p4 = scmp.ne.s32.totalorder (!%p1658_p12), %s1639_s29, 0 }
  0xa4   : > { %278 = sbr.rel (%p1658_p12) target bundleno = 989 (0x3dd), region = 40  ;;  %s1511_s27 = sshll.u32 (!%p1658_p12), %s1508_s8, 4 }
  0xa5   : > { %s281_s17 = scalar_lea.sflag (!%p1658_p12), [#allocation3], %s1508_s8  ;;  %s284_s21 = scalar_lea.vmem (!%p1658_p12), [#allocation2], %s1511_s27 }
  0xab   : > { %1182 = dma.done.wait (%p1659_p4), %s281_s17, 256  }
  0xac   : > { %1184 = vsyncadd (%p1659_p4), %s281_s17, 4294967040  ;;  %s289_s7 = sand.u32 1, %s1276_s22   ;;  %s293_s13 = scalar_lea.vmem [#allocation5], %s1511_s27 }
  0xad   : > { %s290_s28 = scalar_lea.sflag [#allocation6], %s289_s7 }
  0xae   : > { %1186 = dma.done.wait (%p1659_p4), %s290_s28, 512  }
  0xaf   : > { %1188 = vsyncadd (%p1659_p4), %s290_s28, 4294966784  ;;  %s302_s15 = scalar_lea.vmem [#allocation7], %s1511_s27  ;;  %p1660_p8 = scmp.eq.s32.totalorder %s1276_s22, 0 }
  0xb1   : > { %1190 = dma.done.wait (%p1660_p8), [#allocation9], 400   ;;  %p1661_p13 = pmov %p1660_p8 }
  0xb2   : > { %v1530_v0 = vld [vmem:[%s284_s21] sm:$0xff]  ;;  %s1220_s14 = smov 120   ;;  %v350_v2 = vld [vmem:[#allocation8 + $0x8] sm:$0xff]  ;;  %vm365_vm0 = vcmask 195584   ;;  %vm459_vm1 = vcmask 130048   ;;  %s1221_s29 = smov 8  }
  0xb3   : > { %1192 = vsyncadd (%p1661_p13), [#allocation9], 4294966896  ;;  %v349_v1 = vld [vmem:[#allocation8] sm:$0xff]  ;;  %361 = vrot.lane.b32.xlu0 %v1530_v0, %s1220_s14  ;;  %v1533_v3 = vld [vmem:[%s284_s21 + $0x8] sm:$0xff]  ;;  %s1222_s24 = smov 112   ;;  %vm644_vm2 = vcmask 64512  }
  0xb4   : > { %v883_v4 = vpack.c.bf16 %v350_v2, %v349_v1  ;;  %v351_v5 = vld [vmem:[#allocation8 + $0x10] sm:$0xff]  ;;  %v829_v9 = vld [vmem:[#allocation10] ss:$0 sm:$0xff]  ;;  %s346_s9 = scalar_lea.vmem [#allocation11], %s1511_s27  ;;  %s846_s25 = sshll.u32 %s1276_s22, 8 }
  0xb5   : > { %v457_v8 = vld [vmem:[%s293_s13] sm:$0xff]  ;;  %v458_v16 = vld [vmem:[%s293_s13 + $0x8] sm:$0xff]  ;;  %s673_s23 = sshll.u32 %s346_s9, 4  ;;  %s1561_s16 = scalar_lea.hbm %s1613_s5, %s846_s25  ;;  %s1556_s23 = int_to_ptr.vmem [resolvable:$true] %s673_s23 }
  0xb6   : > { %884 = vmatprep.subr.bf16.mxu0 %v883_v4  ;;  %873 = vmatprep.mubr.msk.f32.mxu1 %vm459_vm1, %v457_v8  ;;  %v541_v17 = vld [vmem:[%s302_s15] sm:$0xff]  ;;  %v542_v22 = vld [vmem:[%s302_s15 + $0x8] sm:$0xff]  ;;  %s660_s22 = scalar_lea.sflag [#allocation4], %s1508_s8  ;;  %s1137_s12 = scalar_lea.vmem %s1556_s23, 256 }
  0xb7   : > { %363 = vrot.lane.b32.xlu0 %v1533_v3, %s1220_s14  ;;  %886 = vmatpush3.bf16.msra.mxu0 %v883_v4  ;;  %p1138_p3 = scmp.ne.s32.totalorder %s1556_s23, %s1137_s12  ;;  %p1662_p7 = scmp.ne.s32.totalorder %s1640_s30, 0 }
  0xb8   : > { %864 = vmatprep.subr.mxu0 %v351_v5  ;;  %s1223_s10 = smov [#allocation11]  }
  0xb9   : > { %p1139_p0 = pnand %p1138_p3, %p1662_p7  ;;  %s1141_s1 = sshll.u32 %s1223_s10, 4  ;;  %s1142_s1 = int_to_ptr.vmem [resolvable:$false] %s1141_s1 }
  0xba   : > { %s1143_s11 = scalar_lea.vmem %s1142_s1, 512  ;;  %p1144_p2 = scmp.lt.s32.totalorder %s1556_s23, %s1142_s1 }
  0xbb   : > { %865 = vmatpush3.msra.mxu0 %v351_v5  ;;  %p1140_p6 = pneg %p1139_p0  ;;  %p1145_p9 = scmp.lt.s32.totalorder %s1143_s11, %s1137_s12 }
  0xbd   : > { %p1146_p10 = por %p1145_p9, %p1144_p2 }
  0xbf   : > { %p1147_p1 = pnand %p1146_p10, %p1140_p6 }
 0x125   : > { %v362_v6 = vpop.permute.xlu0 %361 }
 0x126   : > { %866 = vmatprep.mubr.msk.f32.mxu0 %vm365_vm0, %v362_v6 }
 0x129   : > { %v364_v7 = vpop.permute.xlu0 %363 }
 0x12a   : > { %867 = vmatmul.mubr.msk.f32.vlgmr.msra.gmra.mrb[0].mxu0 %vm365_vm0, %v364_v7 }
 0x1fd   : > { %v868_v10 = vpop.f32.mrb[0].mxu0 }
 0x1fe   : > { %v442_v11 = vadd.f32 %v868_v10, %v829_v9  ;;  %v436_v12 = vpop.f32.mrb[1].mxu0 }
 0x1ff   : > { %v437_v13 = vadd.f32 %v829_v9, %v436_v12 }
 0x200   : > { %v833_v25 = vmul.f32 -1.442695, %v442_v11 }
 0x201   : > { %v978_v14 = vpack.i.bf16 %v442_v11, %v437_v13  ;;  %v887_v15 = vpack.c.bf16 %v442_v11, %v437_v13  ;;  %v832_v26 = vmul.f32 -1.442695, %v437_v13 }
 0x202   : > { %983 = vpow2.f32 %v833_v25 }
 0x203   : > { %979 = vrot.lane.b32.xlu1 %v978_v14, %s1220_s14  ;;  %888 = vmatprep.subr.bf16.mxu1 %v887_v15  ;;  %985 = vpow2.f32 %v832_v26 }
 0x204   : > { %890 = vmatpush3.bf16.msra.mxu1 %v887_v15 }
 0x207   : > { %874 = vmatmul.mubr.msk.f32.vlgmr.msra.gmra.mrb[0].mxu1 %vm459_vm1, %v458_v16 }
 0x208   : > { %880 = vmatprep.mubr.msk.f32.mxu1 %vm459_vm1, %v541_v17 }
 0x20c   : > { %v984_v27 = vpop.eup %983 }
 0x20d   : > { %v986_v28 = vpop.eup %985  ;;  %v452_v29 = vadd.f32 1.0, %v984_v27 }
 0x20e   : > { %v451_v30 = vadd.f32 1.0, %v986_v28 }
 0x20f   : > { %987 = vrcp.f32 %v452_v29 }
 0x210   : > { %989 = vrcp.f32 %v451_v30 }
 0x219   : > { %v988_v35 = vpop.eup %987 }
 0x21a   : > { %v990_v36 = vpop.eup %989 }
 0x275   : > { %v980_v18 = vpop.permute.xlu1 %979 }
 0x276   : > { %v982_v19 = vunpack.i.h.bf16 %v980_v18  ;;  %v981_v20 = vunpack.i.l.bf16 %v980_v18 }
 0x278   : > { %v891_v21 = vpack.c.bf16 %v982_v19, %v981_v20 }
 0x27a   : > { %892 = vmatprep.subr.bf16.mxu1 %v891_v21 }
 0x27b   : > { %894 = vmatpush3.bf16.msra.mxu1 %v891_v21 }
 0x27e   : > { %881 = vmatmul.mubr.msk.f32.vlgmr.msra.gmra.mrb[2].mxu1 %vm459_vm1, %v542_v22 }
 0x2da   : > { %v875_v23 = vpop.f32.mrb[0].mxu1 }
 0x2db   : > { %v532_v24 = vpop.f32.mrb[1].mxu1  ;;  %v633_v39 = vmul.f32 %v875_v23, %v1533_v3 }
 0x2dc   : > { %v632_v40 = vmul.f32 %v532_v24, %v1530_v0 }
 0x351   : > { %v882_v31 = vpop.f32.mrb[2].mxu1 }
 0x352   : > { %v635_v32 = vmul.f32 %v882_v31, %v1533_v3  ;;  %v623_v33 = vpop.f32.mrb[3].mxu1 }
 0x353   : > { %v634_v34 = vmul.f32 %v623_v33, %v1530_v0 }
 0x354   : > { %640 = vrot.lane.b32.xlu0 %v635_v32, %s1221_s29 }
 0x355   : > { %638 = vrot.lane.b32.xlu1 %v634_v34, %s1221_s29 }
 0x358   : > { %651 = vrot.lane.b32.xlu0 %v988_v35, %s1222_s24 }
 0x359   : > { %649 = vrot.lane.b32.xlu1 %v990_v36, %s1222_s24 }
 0x3c6   : > { %v641_v37 = vpop.permute.xlu0 %640 }
 0x3c7   : > { %v639_v38 = vpop.permute.xlu1 %638  ;;  %v646_v41 = vsel %vm644_vm2, %v633_v39, %v641_v37 }
 0x3c8   : > { %v645_v44 = vsel %vm644_vm2, %v632_v40, %v639_v38 }
 0x3ca   : > { %v652_v42 = vpop.permute.xlu0 %651 }
 0x3cb   : > { %v656_v43 = vmul.f32 %v652_v42, %v646_v41  ;;  %v650_v45 = vpop.permute.xlu1 %649 }
 0x3cc   : > { %v655_v46 = vmul.f32 %v650_v45, %v645_v44 }
 0x3cd   : > { %658 = vst.msk [vmem:[%s346_s9 + $0x8] sm:$0xff] %vm459_vm1, %v656_v43 }
 0x3ce   : > { %657 = vst.msk [vmem:[%s346_s9] sm:$0xff] %vm459_vm1, %v655_v46 }
 0x3cf   : > { %1150 = shalt.err (!%p1147_p1)
}
 0x3d0   : > { %s1151_s27 = scalar_lea.hbm %s1561_s16, 256  ;;  %s1155_s7 = scalar_lea.hbm %s1613_s5, 512 }
 0x3d1   : > { %p1152_p5 = scmp.ne.s32.totalorder %s1561_s16, %s1151_s27  ;;  %p1156_p4 = scmp.lt.u32.totalorder %s1561_s16, %s1613_s5 }
 0x3d2   : > { %p1157_p8 = scmp.lt.u32.totalorder %s1155_s7, %s1151_s27  ;;  %p1159_p3 = scmp.lt.u32.totalorder %s1151_s27, %s1561_s16 }
 0x3d3   : > { %p1153_p11 = pnand %p1152_p5, %p1662_p7 }
 0x3d4   : > { %p1158_p13 = por %p1157_p8, %p1156_p4 }
 0x3d5   : > { %p1154_p12 = pneg %p1153_p11 }
 0x3d6   : > { %p1160_p0 = por %p1159_p3, %p1158_p13 }
 0x3d8   : > { %p1161_p6 = pnand %p1160_p0, %p1154_p12 }
 0x3da   : > { %1164 = shalt.err (!%p1161_p6)
}
 0x3db   : > { %s1224_s15 = smov 128  }
 0x3dc   : > { %909 = dma.vmem_to_hbm [thread:$0]  (%p1662_p7), %s1556_s23, 256, %s1561_s16, %s660_s22, %s1224_s15, %s1224_s15, %s1221_s29  }
 0x3dd PF: > { %s1663_s14 = sld [smem:[#allocation16_spill]]  ;;  %s688_s24 = sand.u32 1, %s1199_s18  }
 0x3de   : > { %p1664_p2 = scmp.ne.s32.totalorder %s1641_s6, 0  ;;  %s689_s9 = scalar_lea.sflag [#allocation4], %s688_s24 }
 0x3e3   : > { %p1665_p9 = scmp.ge.s32.totalorder %s1663_s14, 2 }
 0x3e5   : > { %p929_p10 = pnand %p1665_p9, %p1664_p2 }
 0x3e7   : > { %1194 = dma.done.wait (!%p929_p10), %s689_s9, 256  }
 0x3e8   : > { %1196 = vsyncadd (!%p929_p10), %s689_s9, 4294967040  ;;  %s1666_s21 = sld [smem:[#allocation17_spill]]  ;;  %s1667_s30 = sld [smem:[#allocation18_spill]] }
 0x3e9   : > { %s1668_s18 = smov %s1203_s19  ;;  %s1669_s19 = smov %s1207_s20 }
 0x3ee   : > { %p22_p1 = scmp.ge.s32.totalorder %s1666_s21, 4   ;;  %s1670_s20 = smov %s1667_s30 }
 0x3f0   :  { %24 = sbr.rel (!%p22_p1) target bundleno = 11 (0xb), region = 117 }
 0x3f7   :  { %694 = vsyncpa [#allocation3], 1 }
 0x3f8   :  { %696 = vsyncpa [#allocation3 + $0x1], 1 }
 0x3f9   :  { %697 = vsyncpa [#allocation6], 1 }
 0x3fa   :  { %699 = vsyncpa [#allocation6 + $0x1], 1 }
 0x3fb   :  { %700 = vsyncpa [#allocation9], 1 }
 0x3fc   :  { %701 = vsyncpa [#allocation4], 1 }
 0x3fd   :  { %703 = vsyncpa [#allocation4 + $0x1], 1 }

</bundles_post_ra>
